<compile_context>
chip_gen: v7x
topology: tpu7x:2x2x1
jax: 0.10.0
libtpu: 0.0.40
codegen_flags: <defaults>
</compile_context>

<pallas_src>
import jax
import jax.numpy as jnp
from jax.experimental import pallas as pl
from jax.experimental.pallas import tpu as pltpu


def pixel_layer_kernel(surf_ref, mask_ref, o_ref, acc_ref):
    # surf_ref / mask_ref: (tB, tP) tiles in VMEM (lane-dense last axis)
    # o_ref:               (tB, 1) output tile
    # acc_ref:             (tB, 1) float32 accumulator scratch (VMEM)
    pix = pl.program_id(1)

    @pl.when(pix == 0)
    def _init():
        acc_ref[...] = jnp.zeros_like(acc_ref)

    # Explicit f32 accumulate (matters for bf16/f16 inputs, esp. on v5e where
    # the VPU has no bf16 path).  The multiply runs on the VPU, the lane
    # reduction on the XLU -- different bundle slots, so both hide under the
    # HBM DMA that dominates this kernel.
    s = surf_ref[...].astype(jnp.float32)
    m = mask_ref[...].astype(jnp.float32)
    acc_ref[...] += jnp.sum(s * m, axis=1, keepdims=True)

    @pl.when(pix == pl.num_programs(1) - 1)
    def _finalize():
        o_ref[...] = acc_ref[...].astype(o_ref.dtype)


def _pick_tiles(B, P):
    """Choose (batch_tile, pixel_tile) sizes.

    Keeps the per-step input tile pair (surface + mask, in f32) around
    <= 4 MiB so the double-buffered pipeline (~8 MiB) fits comfortably under
    every generation's scoped-VMEM default, while keeping the lane axis a
    large multiple of 128 for full-width, unmasked vector loads.
    """
    tB = 8 if B % 8 == 0 else B

    # ~4 MiB budget across both f32 input tiles of one grid step.
    budget_elems = (4 * 1024 * 1024) // (2 * 4)
    cap = max(128, (budget_elems // tB) // 128 * 128)

    if P % 128 != 0 or P <= cap:
        # Small or unaligned pixel counts: single pixel tile per batch tile
        # (block == full dim, so the (8,128) divisibility rule is satisfied).
        return tB, P

    # Largest divisor of P that is a multiple of 128 and <= cap.
    tP = 128
    for cand in range(cap, 127, -128):
        if P % cand == 0:
            tP = cand
            break
    return tB, tP


def pixel_layer(x):
    """x: (B, C, H, W) float array with C >= 2; returns (B,) like PyTorch."""
    B, C, H, W = x.shape
    assert C >= 2, "PixelLayer needs at least 2 channels (surface, mask)"
    P = H * W

    # Free, contiguous reshape: per batch row, columns [0, P) are channel 0
    # (surface) and [P, 2P) are channel 1 (mask).  Channels >= 2 are never
    # windowed, so they are never DMA'd.
    x_flat = x.reshape(B, C * P)

    tB, tP = _pick_tiles(B, P)
    n_pix = P // tP
    n_batch = B // tB
    grid = (n_batch, n_pix)

    surf_spec = pl.BlockSpec((tB, tP), lambda b, p: (b, p))
    mask_spec = pl.BlockSpec((tB, tP), lambda b, p: (b, p + n_pix))
    out_spec = pl.BlockSpec((tB, 1), lambda b, p: (b, 0))

    out = pl.pallas_call(
        pixel_layer_kernel,
        out_shape=jax.ShapeDtypeStruct((B, 1), x.dtype),
        grid=grid,
        in_specs=[surf_spec, mask_spec],
        out_specs=out_spec,
        scratch_shapes=[pltpu.VMEM((tB, 1), jnp.float32)],
        compiler_params=pltpu.CompilerParams(
            # batch axis shards across TCs on v7x; pixel axis carries the
            # resident accumulator so it must be "arbitrary".
            dimension_semantics=("parallel", "arbitrary")),
    )(x_flat, x_flat)
    return out[:, 0]


def _reference(x):
    return jnp.sum(x[:, 0, :, :] * x[:, 1, :, :], axis=(1, 2))


if __name__ == "__main__":
    key = jax.random.PRNGKey(0)

    # PixelLayer has no parameters; only an input tensor is needed.
    # Small NCHW input consistent with the forward (needs C >= 2).
    x = jax.random.normal(key, (2, 4, 16, 16), dtype=jnp.float32)
    value = jax.block_until_ready(pixel_layer(x))
    ref = _reference(x)
    assert value.shape == (2,), value.shape
    assert jnp.allclose(value, ref, atol=1e-5, rtol=1e-5), (value, ref)

    # Secondary sanity check: exercises the multi-batch-tile grid path.
    x2 = jax.random.normal(jax.random.PRNGKey(1), (16, 2, 32, 32),
                           dtype=jnp.float32)
    value2 = jax.block_until_ready(pixel_layer(x2))
    ref2 = _reference(x2)
    assert value2.shape == (16,), value2.shape
    assert jnp.allclose(value2, ref2, atol=1e-4, rtol=1e-5), (value2, ref2)

    print("KERNEL_OK")
</pallas_src>

<mosaic_0001>
module attributes {stable_mosaic.version = 11 : i64} {
  func.func @pixel_layer_kernel(%arg0: i32, %arg1: i32, %arg2: memref<2x256xf32, #tpu.memory_space<vmem>>, %arg3: memref<2x256xf32, #tpu.memory_space<vmem>>, %arg4: memref<2x1xf32, #tpu.memory_space<vmem>>, %arg5: memref<2x1xf32, #tpu.memory_space<vmem>>) attributes {dimension_semantics = [#tpu.dimension_semantics<parallel>, #tpu.dimension_semantics<arbitrary>], iteration_bounds = array<i64: 1, 1>, scalar_prefetch = 0 : i64, scratch_operands = 1 : i64, tpu.core_type = #tpu.core_type<tc>, window_params = [{transform_indices = @transform_0, window_bounds = array<i64: 2, 256>}, {transform_indices = @transform_1, window_bounds = array<i64: 2, 256>}, {transform_indices = @transform_2, window_bounds = array<i64: 2, 1>}]} {
    %c0_i32 = arith.constant 0 : i32
    %0 = arith.cmpi eq, %arg1, %c0_i32 : i32
    %1 = arith.extui %0 : i1 to i32
    %c0_i32_0 = arith.constant 0 : i32
    %2 = arith.cmpi ne, %1, %c0_i32_0 : i32
    scf.if %2 {
      %cst_10 = arith.constant 0.000000e+00 : f32
      %14 = vector.broadcast %cst_10 : f32 to vector<2x1xf32>
      %c0_11 = arith.constant 0 : index
      %c0_12 = arith.constant 0 : index
      %15 = vector.load %arg5[%c0_11, %c0_12] : memref<2x1xf32, #tpu.memory_space<vmem>>, vector<2x1xf32>
      tpu.vector_store %arg5[%c0_11, %c0_12], %14 {strides = array<i32>} : memref<2x1xf32, #tpu.memory_space<vmem>>, vector<2x1xf32>,
    } else {
    }
    %c0 = arith.constant 0 : index
    %c0_1 = arith.constant 0 : index
    %3 = vector.load %arg2[%c0, %c0_1] : memref<2x256xf32, #tpu.memory_space<vmem>>, vector<2x256xf32>
    %c0_2 = arith.constant 0 : index
    %c0_3 = arith.constant 0 : index
    %4 = vector.load %arg3[%c0_2, %c0_3] : memref<2x256xf32, #tpu.memory_space<vmem>>, vector<2x256xf32>
    %c0_4 = arith.constant 0 : index
    %c0_5 = arith.constant 0 : index
    %5 = vector.load %arg5[%c0_4, %c0_5] : memref<2x1xf32, #tpu.memory_space<vmem>>, vector<2x1xf32>
    %6 = arith.mulf %3, %4 : vector<2x256xf32>
    %cst = arith.constant dense<0.000000e+00> : vector<2xf32>
    %7 = vector.multi_reduction <add>, %6, %cst [1] : vector<2x256xf32> to vector<2xf32>
    %8 = vector.shape_cast %7 : vector<2xf32> to vector<2x1xf32>
    %9 = arith.addf %5, %8 : vector<2x1xf32>
    %c0_6 = arith.constant 0 : index
    %c0_7 = arith.constant 0 : index
    %10 = vector.load %arg5[%c0_6, %c0_7] : memref<2x1xf32, #tpu.memory_space<vmem>>, vector<2x1xf32>
    tpu.vector_store %arg5[%c0_6, %c0_7], %9 {strides = array<i32>} : memref<2x1xf32, #tpu.memory_space<vmem>>, vector<2x1xf32>,
    %c0_i32_8 = arith.constant 0 : i32
    %11 = arith.cmpi eq, %arg1, %c0_i32_8 : i32
    %12 = arith.extui %11 : i1 to i32
    %c0_i32_9 = arith.constant 0 : i32
    %13 = arith.cmpi ne, %12, %c0_i32_9 : i32
    scf.if %13 {
      %c0_10 = arith.constant 0 : index
      %c0_11 = arith.constant 0 : index
      %14 = vector.load %arg5[%c0_10, %c0_11] : memref<2x1xf32, #tpu.memory_space<vmem>>, vector<2x1xf32>
      %c0_12 = arith.constant 0 : index
      %c0_13 = arith.constant 0 : index
      %15 = vector.load %arg4[%c0_12, %c0_13] : memref<2x1xf32, #tpu.memory_space<vmem>>, vector<2x1xf32>
      tpu.vector_store %arg4[%c0_12, %c0_13], %14 {strides = array<i32>} : memref<2x1xf32, #tpu.memory_space<vmem>>, vector<2x1xf32>,
    } else {
    }
    return
  }
  func.func @transform_0(%arg0: i32, %arg1: i32) -> (i32, i32) {
    %c0_i32 = arith.constant 0 : i32
    return %arg0, %arg1 : i32, i32
  }
  func.func @transform_1(%arg0: i32, %arg1: i32) -> (i32, i32) {
    %c1_i32 = arith.constant 1 : i32
    %0 = arith.addi %arg1, %c1_i32 : i32
    %c0_i32 = arith.constant 0 : i32
    return %arg0, %0 : i32, i32
  }
  func.func @transform_2(%arg0: i32, %arg1: i32) -> (i32, i32) {
    %c0_i32 = arith.constant 0 : i32
    %c0_i32_0 = arith.constant 0 : i32
    return %arg0, %c0_i32 : i32, i32
  }
}

</mosaic_0001>

<bundles_post_ra>
// kernel: tpu_custom_call.1
= control target key start
LH: loop header
LB: loop body
LE: loop exit
PB: predicated region body
PF: predicated region fallthrough
CT: control target
= control target key end

     0   :  { %7 = vsyncpa [#allocation4], 0  ;;  %s196_s0 = inlined_call_operand.hbm [shape: f32[2,1024], index: 0, kind: input, shape index: {}]   ;;  %s197_s1 = inlined_call_operand.hbm [shape: f32[2,1024], index: 1, kind: input, shape index: {}]   ;;  %s198_s2 = inlined_call_operand.vmem [shape: f32[2,1], index: 2, kind: output, shape index: {}]  }
   0x1   :  { %8 = vsyncpa [#allocation6], 0  ;;  %s160_s11 = scalar_lea.hbm %s197_s1, 64  ;;  %s138_s12 = smov [#allocation3]  }
   0x2   :  { %s15_s13 = sshll.u32 %s138_s12, 4  ;;  %s139_s14 = smov [#allocation5]   ;;  %s16_s13 = int_to_ptr.vmem [resolvable:$true] %s15_s13 }
   0x3   :  { %s29_s15 = sshll.u32 %s139_s14, 4  ;;  %s87_s18 = scalar_lea.hbm %s196_s0, 64  ;;  %s30_s15 = int_to_ptr.vmem [resolvable:$true] %s29_s15 }
   0x4   :  { %p88_p0 = scmp.ne.s32.totalorder %s196_s0, %s87_s18  ;;  %s89_s23 = scalar_lea.hbm %s196_s0, 256 }
   0x5   :  { %p90_p1 = scmp.lt.u32.totalorder %s89_s23, %s87_s18  ;;  %p91_p2 = scmp.lt.u32.totalorder %s87_s18, %s196_s0 }
   0x7   :  { %p92_p3 = por %p91_p2, %p90_p1 }
   0x9   :  { %p93_p4 = pnand %p92_p3, %p88_p0 }
   0xb   :  { %96 = shalt.err (!%p93_p4)
}
   0xc   :  { %s97_s26 = scalar_lea.vmem %s16_s13, 64  ;;  %p102_p6 = scmp.lt.s32.totalorder %s16_s13, %s16_s13 }
   0xd   :  { %p98_p5 = scmp.ne.s32.totalorder %s16_s13, %s97_s26  ;;  %p103_p7 = scmp.lt.s32.totalorder %s97_s26, %s97_s26 }
   0xf   :  { %p104_p8 = por %p103_p7, %p102_p6 }
  0x11   :  { %p105_p9 = pnand %p104_p8, %p98_p5 }
  0x13   :  { %108 = shalt.err (!%p105_p9)
}
  0x14   :  { %18 = dma.hbm_to_vmem [thread:$0]  %s196_s0, 64, %s16_s13, [#allocation4]  }
  0x15   :  { %s133_s3 = scalar_lea.hbm %s197_s1, 128  ;;  %s111_s6 = scalar_lea.hbm %s197_s1, 256 }
  0x16   :  { %p110_p10 = scmp.ne.s32.totalorder %s160_s11, %s133_s3  ;;  %p112_p11 = scmp.lt.u32.totalorder %s160_s11, %s197_s1 }
  0x17   :  { %p113_p12 = scmp.lt.u32.totalorder %s111_s6, %s133_s3  ;;  %p115_p0 = scmp.lt.u32.totalorder %s133_s3, %s160_s11 }
  0x19   :  { %p114_p13 = por %p113_p12, %p112_p11 }
  0x1b   :  { %p116_p1 = por %p115_p0, %p114_p13 }
  0x1d   :  { %p117_p2 = pnand %p116_p1, %p110_p10 }
  0x1f   :  { %120 = shalt.err (!%p117_p2)
}
  0x20   :  { %s121_s0 = scalar_lea.vmem %s30_s15, 64  ;;  %p126_p4 = scmp.lt.s32.totalorder %s30_s15, %s30_s15 }
  0x21   :  { %p122_p3 = scmp.ne.s32.totalorder %s30_s15, %s121_s0  ;;  %p127_p5 = scmp.lt.s32.totalorder %s121_s0, %s121_s0 }
  0x23   :  { %p128_p6 = por %p127_p5, %p126_p4 }
  0x25   :  { %p129_p7 = pnand %p128_p6, %p122_p3 }
  0x27   :  { %132 = shalt.err (!%p129_p7)
}
  0x28   :  { %32 = dma.hbm_to_vmem [thread:$0]  %s160_s11, 64, %s30_s15, [#allocation6]  }
  0x29   :  { %134 = dma.done.wait [#allocation4], 64  }
  0x2a   :  { %135 = vsyncadd [#allocation4], 4294967232 }
  0x2b   :  { %136 = dma.done.wait [#allocation6], 64  }
  0x2c   :  { %137 = vsyncadd [#allocation6], 4294967232  ;;  %vm45_vm0 = vcmask 1024   ;;  %v55_v0 = vlaneseq  ;;  %v140_v1 = vmov 0.0   ;;  %v141_v2 = vmov 1983009808  }
  0x2d   :  { %46 = vst.msk [vmem:[#allocation2] sm:$0x3] %vm45_vm0, %v140_v1  ;;  %v53_v3 = vunpack.c.l.s4 %v141_v2  ;;  %v47_v7 = vld [vmem:[#allocation3] sm:$0xf]  ;;  %v48_v8 = vld [vmem:[#allocation5] sm:$0xf] }
  0x2e   :  { %v56_v4 = vshrl.u32 %v55_v0, 7  ;;  %v50_v9 = vmul.f32 %v48_v8, %v47_v7  ;;  %vm62_vm1 = vcmask 1041408  }
  0x2f   :  { %v54_v5 = vunpack.c.0.s8 %v53_v3 }
  0x31   :  { %v57_v6 = vsub.s32 %v54_v5, %v56_v4 }
  0x33   :  { %v58_v10 = vrot.slane %v50_v9, %v57_v6 }
  0x34   :  { %v49_v15 = vld [vmem:[#allocation2] sm:$0x3] }
  0x35   :  { %v59_v11 = vcombine.high %v58_v10, %v58_v10  ;;  %v63_v12 = vsel %vm62_vm1, %v58_v10, 0.0 }
  0x37   :  { %v64_v13 = vsel %vm62_vm1, %v59_v11, 0.0 }
  0x38   :  { %v65_v14 = vadd.f32 %v64_v13, %v63_v12 }
  0x3a   :  { %66 = vadd.xlane.f32.xlu0 %v65_v14 }
  0xc7   :  { %v67_v16 = vpop.xlane.xlu0 %66 }
  0xc8   :  { %v68_v17 = vadd.f32 %v67_v16, %v49_v15 }
  0xca   :  { %70 = vst.msk [vmem:[#allocation2] sm:$0x3] %vm45_vm0, %v68_v17 }
  0xd1   :  { %v74_v18 = vld [vmem:[#allocation2] sm:$0x3] }
  0xd2   :  { %75 = vst.msk [vmem:[%s198_s2] sm:$0x3] %vm45_vm0, %v74_v18 }
  0xd3   :  { %80 = vsyncpa [#allocation4], 1 }
  0xd4   :  { %81 = vsyncpa [#allocation6], 1 }

</bundles_post_ra>
